<compile_context>
chip_gen: v5e
topology: v5e:2x2
jax: 0.10.0
libtpu: 0.0.40
codegen_flags: <defaults>
</compile_context>

<pallas_src>
import jax
import jax.numpy as jnp
from jax.experimental import pallas as pl
from jax.experimental.pallas import tpu as pltpu

_LANES = 128
_SMALL_N_BYPASS_BYTES = 1 << 20  # below ~1 MiB of output, jnp.full + consumer fusion wins


def _default_rows_per_tile() -> int:
    """Per-generation height (sublane rows) of the (rows, 128) f32 output tile."""
    try:
        kind = jax.devices()[0].device_kind.lower()
    except Exception:
        kind = ""
    if "v7" in kind:
        # ~3.2 TB/s HBM per TC drains small tiles in ~80 ns; need 3-4 MiB per
        # step so DMA time dominates the ~600-cycle grid-step overhead.
        return 8192          # 4 MiB tile; 2 output buffers = 8 MiB << 32 MiB scoped VMEM
    if "v5 lite" in kind or "v5e" in kind:
        return 2048          # 1 MiB tile (~1.25 us at ~820 GB/s); 16 MiB scoped VMEM headroom
    return 4096              # v6e / default: 2 MiB tile


def _variance_kernel(var_ref, o_ref):
    # var_ref: SMEM scalar parameter, shape (1,)
    # o_ref:   VMEM output tile, shape (tile_rows, 128)
    s = jnp.exp(var_ref[0] * 10.0)   # one EUP exp per step; hidden under step overhead
    o_ref[...] = jnp.full(o_ref.shape, s, o_ref.dtype)


def _single_variance_pallas(n: int, variance: jax.Array, rows_per_tile: int | None = None):
    """Always-Pallas path: fill an (n, 1) column with exp(10*variance)."""
    variance = variance.astype(jnp.float32)
    if rows_per_tile is None:
        rows_per_tile = _default_rows_per_tile()

    # Number of 128-lane rows needed to cover N elements, rounded up to the
    # (8, 128) TPU tile granularity.
    rows_needed = -(-n // _LANES)
    rows_needed8 = max(8, -(-rows_needed // 8) * 8)

    # Tile size: big for large N, a single small block for tiny N.
    tile_rows = min(rows_per_tile, rows_needed8)
    tile_rows = -(-tile_rows // 8) * 8        # keep sublane-dim a multiple of 8

    grid_rows = -(-rows_needed8 // tile_rows)
    padded_rows = grid_rows * tile_rows
    padded_n = padded_rows * _LANES

    slab = pl.pallas_call(
        _variance_kernel,
        out_shape=jax.ShapeDtypeStruct((padded_rows, _LANES), jnp.float32),
        grid_spec=pltpu.PrefetchScalarGridSpec(
            num_scalar_prefetch=0,
            grid=(grid_rows,),
            in_specs=[
                # scalar parameter lives in SMEM, shared by every grid step
                pl.BlockSpec(memory_space=pltpu.MemorySpace.SMEM),
            ],
            out_specs=pl.BlockSpec((tile_rows, _LANES), lambda i: (i, 0)),
        ),
        compiler_params=pltpu.CompilerParams(
            dimension_semantics=("parallel",),
        ),
        cost_estimate=pl.CostEstimate(
            flops=0,
            transcendentals=grid_rows,                       # one exp per grid step
            bytes_accessed=4 * padded_rows * _LANES + 4,     # slab write + scalar read
        ),
    )(variance)

    # Free layout plumbing: contiguous slab -> flat -> (N, 1).  Only slice
    # when padding actually exists so the aligned case adds no extra copy.
    flat = slab.reshape(padded_n)
    if padded_n != n:
        flat = flat[:n]
    return flat.reshape(n, 1)


def _single_variance_impl(x: jax.Array, variance: jax.Array):
    n = x.shape[0]
    if n * 4 <= _SMALL_N_BYPASS_BYTES:
        # Small-N fast path: a bare broadcast fuses into the consumer for free;
        # the pallas custom-call launch would dominate here.
        return jnp.ones((n, 1), jnp.float32) * jnp.exp(variance.astype(jnp.float32) * 10.0)
    return _single_variance_pallas(n, variance)


@jax.custom_vjp
def single_variance_forward(x: jax.Array, variance: jax.Array):
    """Pallas/JAX equivalent of SingleVarianceNetwork.forward.

    Args:
      x: array whose leading dim gives the batch length N (values unused).
      variance: shape-(1,) float32 learnable parameter.
    Returns:
      (N, 1) float32 array filled with exp(10 * variance).
    """
    return _single_variance_impl(x, variance)


def _sv_fwd(x, variance):
    return _single_variance_impl(x, variance), (x, variance)


def _sv_bwd(res, g):
    x, variance = res
    # out_i = exp(10*variance)  =>  d out_i / d variance = 10 * exp(10*variance)
    dvar = (10.0 * jnp.exp(variance.astype(jnp.float32) * 10.0)) * jnp.sum(g)
    dvar = dvar.reshape(variance.shape).astype(variance.dtype)
    # forward never reads x's values, only len(x) -> zero cotangent for x.
    return (jnp.zeros_like(x), dvar)


single_variance_forward.defvjp(_sv_fwd, _sv_bwd)


def get_variance(variance: jax.Array):
    """Pure-JAX glue mirroring SingleVarianceNetwork.get_variance (scalar clip)."""
    return jnp.clip(jnp.exp(variance * 10.0), 1e-06, 1e06)


if __name__ == "__main__":
    key = jax.random.PRNGKey(0)

    # Deterministic "init": init_val * ones(1), with init_val = 0.05 (typical NeuS).
    init_val = 0.05
    variance = jnp.full((1,), init_val, dtype=jnp.float32)
    scale_ref = jnp.exp(variance * 10.0)

    # --- small batch through the public API (small-N bypass path) -----------
    x = jax.random.normal(key, (16, 3), dtype=jnp.float32)
    out = jax.block_until_ready(single_variance_forward(x, variance))
    ref = jnp.ones((16, 1), jnp.float32) * scale_ref
    assert out.shape == (16, 1)
    assert jnp.allclose(out, ref, rtol=1e-6, atol=1e-6)

    # --- force the Pallas kernel path (ragged and aligned N) ----------------
    out_p1 = jax.block_until_ready(_single_variance_pallas(1000, variance))
    ref_p1 = jnp.ones((1000, 1), jnp.float32) * scale_ref
    assert out_p1.shape == (1000, 1)
    assert jnp.allclose(out_p1, ref_p1, rtol=1e-6, atol=1e-6)

    out_p2 = jax.block_until_ready(_single_variance_pallas(2048, variance))
    ref_p2 = jnp.ones((2048, 1), jnp.float32) * scale_ref
    assert out_p2.shape == (2048, 1)
    assert jnp.allclose(out_p2, ref_p2, rtol=1e-6, atol=1e-6)

    # --- gradient w.r.t. the learnable variance parameter (custom VJP) ------
    grad_fn = jax.grad(lambda v: jnp.sum(single_variance_forward(x, v)).astype(jnp.float32))
    dvar = jax.block_until_ready(grad_fn(variance))
    dvar_ref = 16.0 * 10.0 * jnp.exp(variance * 10.0)
    assert jnp.allclose(dvar, dvar_ref, rtol=1e-5, atol=1e-5)

    # --- get_variance parity with the PyTorch clip(1e-6, 1e6) ---------------
    gv = get_variance(variance)
    assert jnp.allclose(gv, jnp.clip(jnp.exp(variance * 10.0), 1e-06, 1e06))

    print("KERNEL_OK")
</pallas_src>

<mosaic_0001>
module attributes {stable_mosaic.version = 11 : i64} {
  func.func @_variance_kernel(%arg0: i32, %arg1: memref<1xf32, #tpu.memory_space<smem>>, %arg2: memref<8x128xf32, #tpu.memory_space<vmem>>) attributes {dimension_semantics = [#tpu.dimension_semantics<parallel>], iteration_bounds = array<i64: 1>, scalar_prefetch = 0 : i64, scratch_operands = 0 : i64, tpu.core_type = #tpu.core_type<tc>, window_params = [{transform_indices = @transform_0, window_bounds = array<i64: 1>}, {transform_indices = @transform_1, window_bounds = array<i64: 8, 128>}]} {
    %c0 = arith.constant 0 : index
    %0 = memref.load %arg1[%c0] : memref<1xf32, #tpu.memory_space<smem>>
    %cst = arith.constant 1.000000e+01 : f32
    %1 = arith.mulf %0, %cst : f32
    %2 = math.exp %1 : f32
    %3 = vector.broadcast %2 : f32 to vector<8x128xf32>
    %c0_0 = arith.constant 0 : index
    %c0_1 = arith.constant 0 : index
    %4 = vector.load %arg2[%c0_0, %c0_1] : memref<8x128xf32, #tpu.memory_space<vmem>>, vector<8x128xf32>
    tpu.vector_store %arg2[%c0_0, %c0_1], %3 {strides = array<i32>} : memref<8x128xf32, #tpu.memory_space<vmem>>, vector<8x128xf32>,
    return
  }
  func.func @transform_0(%arg0: i32) -> i32 {
    %c0_i32 = arith.constant 0 : i32
    %c0_i32_0 = arith.constant 0 : i32
    return %c0_i32 : i32
  }
  func.func @transform_1(%arg0: i32) -> (i32, i32) {
    %c0_i32 = arith.constant 0 : i32
    %c0_i32_0 = arith.constant 0 : i32
    return %arg0, %c0_i32 : i32, i32
  }
}

</mosaic_0001>

<bundles_post_ra>
// kernel: tpu_custom_call.1
= control target key start
LH: loop header
LB: loop body
LE: loop exit
PB: predicated region body
PF: predicated region fallthrough
CT: control target
= control target key end

     0   :  { %s82_s0 = inlined_call_operand.<no memory space> [shape: f32[1], index: 0, kind: input, shape index: {}]   ;;  %s83_s1 = inlined_call_operand.hbm [shape: f32[8,128], index: 1, kind: output, shape index: {}]  }
   0x1   :  { %s11_s8 = smul.f32 10.0, %s82_s0 }
   0x2   :  { %7 = vsyncpa [#allocation4], 0  ;;  %s65_s9 = smov [#allocation3]   ;;  %s25_s13 = sshll.u32 %s83_s1, 4  ;;  %s26_s13 = int_to_ptr.hbm [resolvable:$true] %s25_s13 }
   0x3   :  { %v12_v0 = vstv %s11_s8  ;;  %s23_s10 = sshll.u32 %s65_s9, 4  ;;  %s24_s10 = int_to_ptr.vmem [resolvable:$true] %s23_s10 }
   0x4   :  { %v13_v1 = vmul.f32 1.442695, %v12_v0 }
   0x6   :  { %37 = vpow2.f32 %v13_v1 }
   0xc   :  { %v38_v2 = vpop.eup %37 }
   0xd   :  { %34 = vpush %v38_v2 }
  0x3e   :  { %s35_s14 = spop %34 }
  0x3f   :  { %v16_v3 = vstv %s35_s14 }
  0x40   :  { %17 = vst [vmem:[#allocation3] sm:$0xff] %v16_v3 }
  0x41   :  { %28 = dma.vmem_to_hbm [thread:$0]  %s24_s10, 128, %s26_s13, [#allocation4]  }
  0x42   :  { %63 = dma.done.wait [#allocation4], 128  }
  0x43   :  { %64 = vsyncadd [#allocation4], 4294967168 }
  0x44   :  { %33 = vsyncpa [#allocation4], 1 }

</bundles_post_ra>
